<compile_context>
chip_gen: v6e
topology: v6e:2x2x1
jax: 0.10.0
libtpu: 0.0.40
codegen_flags: <defaults>
</compile_context>

<pallas_src>
import jax
import jax.numpy as jnp
from jax.experimental import pallas as pl
from jax.experimental.pallas import tpu as pltpu


# Padded layer widths.
_KP = 8     # layer-0 fan-in: 3 -> 8 (sublane-aligned input rows)
_H = 128    # every hidden width padded to one full lane tile
_NP = 8     # output fan-out: 1 -> 8 (lane-padded result, wrapper slices col 0)


def mlp_kernel(x_ref, w0_ref, wmid_ref, w4_ref, b_ref, o_ref):
    """Fused 5-layer MLP: bf16 MXU matmuls, f32 accumulation, f32 bias/ReLU."""
    f32 = jnp.float32
    bf16 = jnp.bfloat16

    # input: Linear(3->128), no activation.
    h = jnp.dot(x_ref[...].astype(bf16), w0_ref[...],
                preferred_element_type=f32) + b_ref[0:1, :]
    # layer1: Linear(128->128) + ReLU
    h = jnp.maximum(
        jnp.dot(h.astype(bf16), wmid_ref[0], preferred_element_type=f32)
        + b_ref[1:2, :], 0.0)
    # layer2: Linear(128->64) + ReLU   (cols zero-padded to 128)
    h = jnp.maximum(
        jnp.dot(h.astype(bf16), wmid_ref[1], preferred_element_type=f32)
        + b_ref[2:3, :], 0.0)
    # layer3: Linear(64->32) + ReLU    (rows/cols zero-padded to 128)
    h = jnp.maximum(
        jnp.dot(h.astype(bf16), wmid_ref[2], preferred_element_type=f32)
        + b_ref[3:4, :], 0.0)
    # output: Linear(32->1)            (fan-out zero-padded to 8 lanes)
    out = jnp.dot(h.astype(bf16), w4_ref[...],
                  preferred_element_type=f32) + b_ref[4:5, :_NP]
    o_ref[...] = out.astype(o_ref.dtype)


def _round_up(a, m):
    return (a + m - 1) // m * m


def _pack_params(params):
    """Zero-pad + pack the 5 (W, b) pairs into 4 VMEM-resident operands:
         w0   (8, 128)      bf16
         wmid (3, 128, 128) bf16   (layers 1..3)
         w4   (128, 8)      bf16
         bias (8, 128)      f32    (row l = layer-l bias, zero-padded)
    """
    def pad_w(w, pin, pout):
        fi, fo = w.shape
        return jnp.zeros((pin, pout), jnp.float32).at[:fi, :fo].set(w)

    (w0, _), (w1, _), (w2, _), (w3, _), (w4, _) = params
    w0p = pad_w(w0, _KP, _H).astype(jnp.bfloat16)
    wmid = jnp.stack(
        [pad_w(w1, _H, _H), pad_w(w2, _H, _H), pad_w(w3, _H, _H)]
    ).astype(jnp.bfloat16)
    w4p = pad_w(w4, _H, _NP).astype(jnp.bfloat16)

    bias = jnp.zeros((8, _H), jnp.float32)
    for l, (_, b) in enumerate(params):
        bias = bias.at[l, : b.shape[-1]].set(b.reshape(-1))
    return w0p, wmid, w4p, bias


def _choose_tb(B, max_tb):
    """Whole (8-aligned) batch for small inputs. For large batches cap the
    tile so the grid has >= 2 steps (lets the 'parallel' axis shard across
    both TensorCores on v7x) and never exceeds max_tb rows."""
    b8 = _round_up(B, 8)
    if b8 <= 512:
        return b8
    return min(max_tb, _round_up((b8 + 1) // 2, 8))


def mlp_forward(x, params, *, max_tb=2048):
    """params: list of (W (in,out), b (1,out)) in the original shapes."""
    B, Din = x.shape
    Dout = params[-1][0].shape[1]          # 1
    w0p, wmid, w4p, bias = _pack_params(params)

    tb = _choose_tb(B, max_tb)
    Bp = _round_up(B, tb)

    # Zero-pad x to (Bp, 8): aligned rows, 32 B/row input DMA.
    xp = jnp.zeros((Bp, _KP), x.dtype).at[:B, :Din].set(x)

    # Weights/biases: whole arrays resident in VMEM, outside the pipeline.
    vmem = pl.BlockSpec(memory_space=pltpu.MemorySpace.VMEM)

    out = pl.pallas_call(
        mlp_kernel,
        out_shape=jax.ShapeDtypeStruct((Bp, _NP), x.dtype),
        grid=(Bp // tb,),
        in_specs=[pl.BlockSpec((tb, _KP), lambda i: (i, 0)),
                  vmem, vmem, vmem, vmem],
        out_specs=pl.BlockSpec((tb, _NP), lambda i: (i, 0)),
        compiler_params=pltpu.CompilerParams(
            dimension_semantics=("parallel",),
            vmem_limit_bytes=32 * 1024 * 1024),
    )(xp, w0p, wmid, w4p, bias)

    # Drop batch padding and padded output lanes.
    return out[:B, :Dout]


def init_params(key):
    """nn.Linear default init U(-1/sqrt(fan_in), 1/sqrt(fan_in)).
    Weights returned as (in, out); biases as (1, out)."""
    dims = [(3, 128), (128, 128), (128, 64), (64, 32), (32, 1)]
    params = []
    for (fan_in, fan_out) in dims:
        key, kw, kb = jax.random.split(key, 3)
        bound = 1.0 / jnp.sqrt(jnp.float32(fan_in))
        w = jax.random.uniform(kw, (fan_in, fan_out), jnp.float32, -bound, bound)
        b = jax.random.uniform(kb, (1, fan_out), jnp.float32, -bound, bound)
        params.append((w, b))
    return params


def reference_forward(x, params):
    h = x @ params[0][0] + params[0][1]
    h = jnp.maximum(h @ params[1][0] + params[1][1], 0.0)
    h = jnp.maximum(h @ params[2][0] + params[2][1], 0.0)
    h = jnp.maximum(h @ params[3][0] + params[3][1], 0.0)
    return h @ params[4][0] + params[4][1]


if __name__ == "__main__":
    key = jax.random.PRNGKey(0)
    key, kx = jax.random.split(key)
    batch = 16                      # Boston-housing style rows, (batch, 3) features
    x = jax.random.normal(kx, (batch, 3), jnp.float32)

    params = init_params(key)

    out = mlp_forward(x, params)
    out = jax.block_until_ready(out)

    ref = reference_forward(x, params)
    assert out.shape == (batch, 1)
    # bf16 MXU inputs (f32 accumulation) => looser tolerance vs f32 reference.
    assert jnp.allclose(out, ref, atol=5e-2, rtol=5e-2)

    print("KERNEL_OK")
</pallas_src>

<mosaic_0001>
module attributes {stable_mosaic.version = 11 : i64} {
  func.func @mlp_kernel(%arg0: i32, %arg1: memref<16x8xf32, #tpu.memory_space<vmem>>, %arg2: memref<8x128xbf16, #tpu.memory_space<vmem>>, %arg3: memref<3x128x128xbf16, #tpu.memory_space<vmem>>, %arg4: memref<128x8xbf16, #tpu.memory_space<vmem>>, %arg5: memref<8x128xf32, #tpu.memory_space<vmem>>, %arg6: memref<16x8xf32, #tpu.memory_space<vmem>>) attributes {dimension_semantics = [#tpu.dimension_semantics<parallel>], iteration_bounds = array<i64: 1>, scalar_prefetch = 0 : i64, scratch_operands = 0 : i64, tpu.core_type = #tpu.core_type<tc>, window_params = [{transform_indices = @transform_0, window_bounds = array<i64: 16, 8>}, {pipeline_mode = #tpu.pipeline_mode<synchronous>, transform_indices = @transform_1, window_bounds = array<i64: 8, 128>}, {pipeline_mode = #tpu.pipeline_mode<synchronous>, transform_indices = @transform_2, window_bounds = array<i64: 3, 128, 128>}, {pipeline_mode = #tpu.pipeline_mode<synchronous>, transform_indices = @transform_3, window_bounds = array<i64: 128, 8>}, {pipeline_mode = #tpu.pipeline_mode<synchronous>, transform_indices = @transform_4, window_bounds = array<i64: 8, 128>}, {transform_indices = @transform_5, window_bounds = array<i64: 16, 8>}]} {
    %c0 = arith.constant 0 : index
    %c0_0 = arith.constant 0 : index
    %0 = vector.load %arg1[%c0, %c0_0] : memref<16x8xf32, #tpu.memory_space<vmem>>, vector<16x8xf32>
    %1 = arith.truncf %0 : vector<16x8xf32> to vector<16x8xbf16>
    %c0_1 = arith.constant 0 : index
    %c0_2 = arith.constant 0 : index
    %2 = vector.load %arg2[%c0_1, %c0_2] : memref<8x128xbf16, #tpu.memory_space<vmem>>, vector<8x128xbf16>
    %cst = arith.constant dense<0.000000e+00> : vector<16x128xf32>
    %3 = tpu.matmul %1, %2, %cst {dimension_numbers = #tpu.dot_dimension_numbers<[1], [0], [0], [1], [0, 0, 1, 1], [], []>} : vector<16x8xbf16>, vector<8x128xbf16>, vector<16x128xf32> -> vector<16x128xf32>
    %c0_3 = arith.constant 0 : index
    %c0_4 = arith.constant 0 : index
    %4 = vector.load %arg5[%c0_3, %c0_4] : memref<8x128xf32, #tpu.memory_space<vmem>>, vector<1x128xf32>
    %5 = vector.broadcast %4 : vector<1x128xf32> to vector<16x128xf32>
    %6 = arith.addf %3, %5 : vector<16x128xf32>
    %7 = arith.truncf %6 : vector<16x128xf32> to vector<16x128xbf16>
    %c0_5 = arith.constant 0 : index
    %c0_6 = arith.constant 0 : index
    %c0_7 = arith.constant 0 : index
    %8 = vector.load %arg3[%c0_5, %c0_6, %c0_7] : memref<3x128x128xbf16, #tpu.memory_space<vmem>>, vector<1x128x128xbf16>
    %9 = vector.shape_cast %8 : vector<1x128x128xbf16> to vector<128x128xbf16>
    %cst_8 = arith.constant dense<0.000000e+00> : vector<16x128xf32>
    %10 = tpu.matmul %7, %9, %cst_8 {dimension_numbers = #tpu.dot_dimension_numbers<[1], [0], [0], [1], [0, 0, 1, 1], [], []>} : vector<16x128xbf16>, vector<128x128xbf16>, vector<16x128xf32> -> vector<16x128xf32>
    %c1 = arith.constant 1 : index
    %c0_9 = arith.constant 0 : index
    %11 = vector.load %arg5[%c1, %c0_9] : memref<8x128xf32, #tpu.memory_space<vmem>>, vector<1x128xf32>
    %12 = vector.broadcast %11 : vector<1x128xf32> to vector<16x128xf32>
    %13 = arith.addf %10, %12 : vector<16x128xf32>
    %cst_10 = arith.constant 0.000000e+00 : f32
    %14 = vector.broadcast %cst_10 : f32 to vector<16x128xf32>
    %15 = arith.maximumf %13, %14 : vector<16x128xf32>
    %16 = arith.truncf %15 : vector<16x128xf32> to vector<16x128xbf16>
    %c1_11 = arith.constant 1 : index
    %c0_12 = arith.constant 0 : index
    %c0_13 = arith.constant 0 : index
    %17 = vector.load %arg3[%c1_11, %c0_12, %c0_13] : memref<3x128x128xbf16, #tpu.memory_space<vmem>>, vector<1x128x128xbf16>
    %18 = vector.shape_cast %17 : vector<1x128x128xbf16> to vector<128x128xbf16>
    %cst_14 = arith.constant dense<0.000000e+00> : vector<16x128xf32>
    %19 = tpu.matmul %16, %18, %cst_14 {dimension_numbers = #tpu.dot_dimension_numbers<[1], [0], [0], [1], [0, 0, 1, 1], [], []>} : vector<16x128xbf16>, vector<128x128xbf16>, vector<16x128xf32> -> vector<16x128xf32>
    %c2 = arith.constant 2 : index
    %c0_15 = arith.constant 0 : index
    %20 = vector.load %arg5[%c2, %c0_15] : memref<8x128xf32, #tpu.memory_space<vmem>>, vector<1x128xf32>
    %21 = vector.broadcast %20 : vector<1x128xf32> to vector<16x128xf32>
    %22 = arith.addf %19, %21 : vector<16x128xf32>
    %cst_16 = arith.constant 0.000000e+00 : f32
    %23 = vector.broadcast %cst_16 : f32 to vector<16x128xf32>
    %24 = arith.maximumf %22, %23 : vector<16x128xf32>
    %25 = arith.truncf %24 : vector<16x128xf32> to vector<16x128xbf16>
    %c2_17 = arith.constant 2 : index
    %c0_18 = arith.constant 0 : index
    %c0_19 = arith.constant 0 : index
    %26 = vector.load %arg3[%c2_17, %c0_18, %c0_19] : memref<3x128x128xbf16, #tpu.memory_space<vmem>>, vector<1x128x128xbf16>
    %27 = vector.shape_cast %26 : vector<1x128x128xbf16> to vector<128x128xbf16>
    %cst_20 = arith.constant dense<0.000000e+00> : vector<16x128xf32>
    %28 = tpu.matmul %25, %27, %cst_20 {dimension_numbers = #tpu.dot_dimension_numbers<[1], [0], [0], [1], [0, 0, 1, 1], [], []>} : vector<16x128xbf16>, vector<128x128xbf16>, vector<16x128xf32> -> vector<16x128xf32>
    %c3 = arith.constant 3 : index
    %c0_21 = arith.constant 0 : index
    %29 = vector.load %arg5[%c3, %c0_21] : memref<8x128xf32, #tpu.memory_space<vmem>>, vector<1x128xf32>
    %30 = vector.broadcast %29 : vector<1x128xf32> to vector<16x128xf32>
    %31 = arith.addf %28, %30 : vector<16x128xf32>
    %cst_22 = arith.constant 0.000000e+00 : f32
    %32 = vector.broadcast %cst_22 : f32 to vector<16x128xf32>
    %33 = arith.maximumf %31, %32 : vector<16x128xf32>
    %34 = arith.truncf %33 : vector<16x128xf32> to vector<16x128xbf16>
    %c0_23 = arith.constant 0 : index
    %c0_24 = arith.constant 0 : index
    %35 = vector.load %arg4[%c0_23, %c0_24] : memref<128x8xbf16, #tpu.memory_space<vmem>>, vector<128x8xbf16>
    %cst_25 = arith.constant dense<0.000000e+00> : vector<16x8xf32>
    %36 = tpu.matmul %34, %35, %cst_25 {dimension_numbers = #tpu.dot_dimension_numbers<[1], [0], [0], [1], [0, 0, 1, 1], [], []>} : vector<16x128xbf16>, vector<128x8xbf16>, vector<16x8xf32> -> vector<16x8xf32>
    %c4 = arith.constant 4 : index
    %c0_26 = arith.constant 0 : index
    %37 = vector.load %arg5[%c4, %c0_26] : memref<8x128xf32, #tpu.memory_space<vmem>>, vector<1x8xf32>
    %38 = vector.broadcast %37 : vector<1x8xf32> to vector<16x8xf32>
    %39 = arith.addf %36, %38 : vector<16x8xf32>
    %c0_27 = arith.constant 0 : index
    %c0_28 = arith.constant 0 : index
    %40 = vector.load %arg6[%c0_27, %c0_28] : memref<16x8xf32, #tpu.memory_space<vmem>>, vector<16x8xf32>
    tpu.vector_store %arg6[%c0_27, %c0_28], %39 {strides = array<i32>} : memref<16x8xf32, #tpu.memory_space<vmem>>, vector<16x8xf32>,
    return
  }
  func.func @transform_0(%arg0: i32) -> (i32, i32) {
    %c0_i32 = arith.constant 0 : i32
    %c0_i32_0 = arith.constant 0 : i32
    return %arg0, %c0_i32 : i32, i32
  }
  func.func @transform_1(%arg0: i32) -> (i32, i32) {
    %c0_i32 = arith.constant 0 : i32
    %c0_i32_0 = arith.constant 0 : i32
    %c0_i32_1 = arith.constant 0 : i32
    return %c0_i32, %c0_i32_0 : i32, i32
  }
  func.func @transform_2(%arg0: i32) -> (i32, i32, i32) {
    %c0_i32 = arith.constant 0 : i32
    %c0_i32_0 = arith.constant 0 : i32
    %c0_i32_1 = arith.constant 0 : i32
    %c0_i32_2 = arith.constant 0 : i32
    return %c0_i32, %c0_i32_0, %c0_i32_1 : i32, i32, i32
  }
  func.func @transform_3(%arg0: i32) -> (i32, i32) {
    %c0_i32 = arith.constant 0 : i32
    %c0_i32_0 = arith.constant 0 : i32
    %c0_i32_1 = arith.constant 0 : i32
    return %c0_i32, %c0_i32_0 : i32, i32
  }
  func.func @transform_4(%arg0: i32) -> (i32, i32) {
    %c0_i32 = arith.constant 0 : i32
    %c0_i32_0 = arith.constant 0 : i32
    %c0_i32_1 = arith.constant 0 : i32
    return %c0_i32, %c0_i32_0 : i32, i32
  }
  func.func @transform_5(%arg0: i32) -> (i32, i32) {
    %c0_i32 = arith.constant 0 : i32
    %c0_i32_0 = arith.constant 0 : i32
    return %arg0, %c0_i32 : i32, i32
  }
}

</mosaic_0001>

<bundles_post_ra>
// kernel: tpu_custom_call.1
= control target key start
LH: loop header
LB: loop body
LE: loop exit
PB: predicated region body
PF: predicated region fallthrough
CT: control target
= control target key end

     0   :  { %10 = vsyncpa [#allocation3], 0  ;;  %s773_s18 = smov [#allocation2]   ;;  %s911_s0 = inlined_call_operand.vmem [shape: f32[16,8], index: 0, kind: input, shape index: {}]   ;;  %s912_s1 = inlined_call_operand.vmem [shape: bf16[8,128], index: 1, kind: input, shape index: {}]   ;;  %s913_s2 = inlined_call_operand.hbm [shape: bf16[3,128,128], index: 2, kind: input, shape index: {}]   ;;  %s914_s3 = inlined_call_operand.vmem [shape: bf16[128,8], index: 3, kind: input, shape index: {}]   ;;  %s915_s4 = inlined_call_operand.vmem [shape: f32[8,128], index: 4, kind: input, shape index: {}]   ;;  %s916_s5 = inlined_call_operand.vmem [shape: f32[16,8], index: 5, kind: output, shape index: {}]  }
   0x1   :  { %s20_s19 = sshll.u32 %s773_s18, 4  ;;  %s21_s19 = int_to_ptr.vmem [resolvable:$true] %s20_s19 }
   0x2   :  { %s759_s20 = scalar_lea.vmem %s21_s19, 3072  ;;  %p764_p1 = scmp.lt.s32.totalorder %s21_s19, %s21_s19 }
   0x3   :  { %p760_p0 = scmp.ne.s32.totalorder %s21_s19, %s759_s20  ;;  %p765_p2 = scmp.lt.s32.totalorder %s759_s20, %s759_s20 }
   0x5   :  { %p766_p3 = por %p765_p2, %p764_p1 }
   0x7   :  { %p767_p4 = pnand %p766_p3, %p760_p0 }
   0x9   :  { %770 = shalt.err (!%p767_p4)
}
   0xa   :  { %s774_s21 = smov 64   ;;  %s775_s22 = smov 4  }
   0xb   :  { %26 = dma.hbm_to_vmem [thread:$0]  %s913_s2, 3072, %s21_s19, [#allocation3], %s774_s21, %s774_s21, %s775_s22  }
   0xc   :  { %771 = dma.done.wait [#allocation3], 3072  }
   0xd   :  { %772 = vsyncadd [#allocation3], 4294964224  ;;  %v776_v0 = vmov 0.0   ;;  %vm777_vm0 = vmmov 0   ;;  %vm48_vm1 = vcmask 1043456   ;;  %v35_v2 = vld [vmem:[%s911_s0] sm:$0xff] }
   0xe   :  { %628 = vmatprep.subr.bf16.mxu0 %v776_v0  ;;  %630 = vmatprep.mubr.msk.bf16.mxu0 %vm777_vm0, %v776_v0  ;;  %v38_v1 = vld [vmem:[%s912_s1] sm:$0xf]  ;;  %v36_v3 = vld [vmem:[%s911_s0 + $0x8] sm:$0xff]  ;;  %v719_v6 = vld [vmem:[#allocation2 + $0x38] sm:$0xff]   ;;  %vm44_vm2 = vcmask 64512  }
   0xf   :  { %634 = vmatprep.subr.bf16.mxu1 %v776_v0  ;;  %650 = vmatprep.mubr.msk.bf16.mxu1 %vm777_vm0, %v776_v0  ;;  %v50_v4 = vsel %vm48_vm1, %v38_v1, 0  ;;  %v37_v5 = vpack.c.bf16 %v36_v3, %v35_v2  ;;  %v720_v7 = vld [vmem:[#allocation2 + $0x30] sm:$0xff]   ;;  %v721_v8 = vld [vmem:[#allocation2 + $0x28] sm:$0xff]   ;;  %v722_v9 = vld [vmem:[#allocation2 + $0x20] sm:$0xff]  }
  0x10   :  { %629 = vmatpush3.bf16.msra.mxu0 %v50_v4  ;;  %635 = vmatpush3.bf16.msra.mxu1 %v719_v6  ;;  %v723_v10 = vld [vmem:[#allocation2 + $0x18] sm:$0xff]   ;;  %v724_v11 = vld [vmem:[#allocation2 + $0x10] sm:$0xff]   ;;  %v725_v12 = vld [vmem:[#allocation2 + $0x8] sm:$0xff]  }
  0x11   :  { %654 = vmatprep.subr.bf16.mxu0 %v776_v0  ;;  %636 = vmatprep.subr.bf16.mxu1 %v776_v0  ;;  %v726_v13 = vld [vmem:[#allocation2] sm:$0xff]   ;;  %v727_v14 = vld [vmem:[#allocation2 + $0x78] sm:$0xff]   ;;  %v728_v15 = vld [vmem:[#allocation2 + $0x70] sm:$0xff]  }
  0x12   :  { %v729_v16 = vld [vmem:[#allocation2 + $0x68] sm:$0xff]   ;;  %v730_v17 = vld [vmem:[#allocation2 + $0x60] sm:$0xff]   ;;  %v731_v18 = vld [vmem:[#allocation2 + $0x58] sm:$0xff]  }
  0x13   :  { %631 = vmatmul.mubr.msk.bf16.vlgmr.msra.gmra.mxu0 %vm44_vm2, %v37_v5  ;;  %v552_v20 = vld [vmem:[%s915_s4] ss:$0 sm:$0xff]  ;;  %v732_v27 = vld [vmem:[#allocation2 + $0x50] sm:$0xff]   ;;  %v733_v28 = vld [vmem:[#allocation2 + $0x48] sm:$0xff]  }
  0x14   :  { %670 = vmatprep.mubr.msk.bf16.mxu0 %vm777_vm0, %v776_v0  ;;  %637 = vmatpush3.bf16.msra.mxu1 %v720_v7  ;;  %v734_v29 = vld [vmem:[#allocation2 + $0x40] sm:$0xff]   ;;  %v735_v30 = vld [vmem:[#allocation2 + $0xb8] sm:$0xff]   ;;  %v736_v31 = vld [vmem:[#allocation2 + $0xb0] sm:$0xff]  }
  0x15   :  { %638 = vmatprep.subr.bf16.mxu1 %v776_v0  ;;  %655 = vmatpush3.bf16.msra.mxu0 %v727_v14  ;;  %v737_v32 = vld [vmem:[#allocation2 + $0xa8] sm:$0xff]   ;;  %v738_v33 = vld [vmem:[#allocation2 + $0xa0] sm:$0xff]   ;;  %v739_v34 = vld [vmem:[#allocation2 + $0x98] sm:$0xff]  }
  0x16   :  { %656 = vmatprep.subr.bf16.mxu0 %v776_v0  ;;  %v554_v35 = vld [vmem:[%s915_s4 + $0x1] ss:$0 sm:$0xff]  ;;  %v740_v45 = vld [vmem:[#allocation2 + $0x90] sm:$0xff]   ;;  %v741_v46 = vld [vmem:[#allocation2 + $0x88] sm:$0xff]  }
  0x17   :  { %v742_v47 = vld [vmem:[#allocation2 + $0x80] sm:$0xff]   ;;  %v743_v48 = vld [vmem:[%s914_s3 + $0x38] sm:$0xff]   ;;  %v744_v49 = vld [vmem:[%s914_s3 + $0x30] sm:$0xff]  }
  0x18   :  { %639 = vmatpush3.bf16.msra.mxu1 %v721_v8  ;;  %v745_v50 = vld [vmem:[%s914_s3 + $0x28] sm:$0xff]   ;;  %v746_v51 = vld [vmem:[%s914_s3 + $0x20] sm:$0xff]   ;;  %v747_v52 = vld [vmem:[%s914_s3 + $0x18] sm:$0xff]  }
  0x19   :  { %640 = vmatprep.subr.bf16.mxu1 %v776_v0  ;;  %657 = vmatpush3.bf16.msra.mxu0 %v728_v15  ;;  %v563_v53 = vld [vmem:[%s915_s4 + $0x2] ss:$0 sm:$0xff]  ;;  %v748_v63 = vld [vmem:[%s914_s3 + $0x10] sm:$0xff]   ;;  %v749_v1 = vld [vmem:[%s914_s3 + $0x8] sm:$0xff]  }
  0x1a   :  { %658 = vmatprep.subr.bf16.mxu0 %v776_v0  ;;  %v750_v2 = vld [vmem:[%s914_s3] sm:$0xff]  }
  0x1b   :  { %v572_v3 = vld [vmem:[%s915_s4 + $0x3] ss:$0 sm:$0xff] }
  0x1c   :  { %641 = vmatpush3.bf16.msra.mxu1 %v722_v9 }
  0x1d   :  { %642 = vmatprep.subr.bf16.mxu1 %v776_v0  ;;  %659 = vmatpush3.bf16.msra.mxu0 %v729_v16 }
  0x1e   :  { %660 = vmatprep.subr.bf16.mxu0 %v776_v0 }
  0x20   :  { %643 = vmatpush3.bf16.msra.mxu1 %v723_v10 }
  0x21   :  { %644 = vmatprep.subr.bf16.mxu1 %v776_v0  ;;  %661 = vmatpush3.bf16.msra.mxu0 %v730_v17 }
  0x22   :  { %662 = vmatprep.subr.bf16.mxu0 %v776_v0 }
  0x24   :  { %645 = vmatpush3.bf16.msra.mxu1 %v724_v11 }
  0x25   :  { %646 = vmatprep.subr.bf16.mxu1 %v776_v0  ;;  %663 = vmatpush3.bf16.msra.mxu0 %v731_v18 }
  0x26   :  { %664 = vmatprep.subr.bf16.mxu0 %v776_v0 }
  0x28   :  { %647 = vmatpush3.bf16.msra.mxu1 %v725_v12 }
  0x29   :  { %648 = vmatprep.subr.bf16.mxu1 %v776_v0  ;;  %665 = vmatpush3.bf16.msra.mxu0 %v732_v27 }
  0x2a   :  { %666 = vmatprep.subr.bf16.mxu0 %v776_v0 }
  0x2c   :  { %649 = vmatpush3.bf16.msra.mxu1 %v726_v13 }
  0x2d   :  { %674 = vmatprep.subr.bf16.mxu1 %v776_v0  ;;  %667 = vmatpush3.bf16.msra.mxu0 %v733_v28 }
  0x2e   :  { %668 = vmatprep.subr.bf16.mxu0 %v776_v0 }
  0x31   :  { %669 = vmatpush3.bf16.msra.mxu0 %v734_v29 }
  0x32   :  { %694 = vmatprep.subr.bf16.mxu0 %v776_v0 }
  0xd3   :  { %v86_v19 = vpop.f32.mrf.mxu0 }
  0xd4   :  { %v87_v23 = vadd.f32 %v552_v20, %v86_v19 }
  0xd5   :  { %v632_v21 = vpop.f32.mrf.mxu0 }
  0xd7   :  { %v89_v22 = vpop.f32.mrf.mxu0 }
  0xd8   :  { %v90_v24 = vadd.f32 %v552_v20, %v89_v22 }
  0xd9   :  { %v633_v25 = vpop.f32.mrf.mxu0 }
  0xda   :  { %v93_v26 = vpack.c.bf16 %v90_v24, %v87_v23 }
  0xdc   :  { %651 = vmatmul.mubr.bf16.vlgmr.msra.gmra.mxu1 %v93_v26 }
  0xdd   :  { %690 = vmatprep.mubr.msk.bf16.mxu1 %vm777_vm0, %v776_v0  ;;  %675 = vmatpush3.bf16.msra.mxu1 %v735_v30 }
  0xde   :  { %676 = vmatprep.subr.bf16.mxu1 %v776_v0 }
  0xe1   :  { %677 = vmatpush3.bf16.msra.mxu1 %v736_v31 }
  0xe2   :  { %678 = vmatprep.subr.bf16.mxu1 %v776_v0 }
  0xe5   :  { %679 = vmatpush3.bf16.msra.mxu1 %v737_v32 }
  0xe6   :  { %680 = vmatprep.subr.bf16.mxu1 %v776_v0 }
  0xe9   :  { %681 = vmatpush3.bf16.msra.mxu1 %v738_v33 }
  0xea   :  { %682 = vmatprep.subr.bf16.mxu1 %v776_v0 }
  0xed   :  { %683 = vmatpush3.bf16.msra.mxu1 %v739_v34 }
  0xee   :  { %684 = vmatprep.subr.bf16.mxu1 %v776_v0 }
  0xf1   :  { %685 = vmatpush3.bf16.msra.mxu1 %v740_v45 }
  0xf2   :  { %686 = vmatprep.subr.bf16.mxu1 %v776_v0 }
  0xf5   :  { %687 = vmatpush3.bf16.msra.mxu1 %v741_v46 }
  0xf6   :  { %688 = vmatprep.subr.bf16.mxu1 %v776_v0 }
  0xf9   :  { %689 = vmatpush3.bf16.msra.mxu1 %v742_v47 }
 0x19c   :  { %v197_v36 = vpop.f32.mrf.mxu1 }
 0x19d   :  { %v198_v38 = vadd.f32 %v554_v35, %v197_v36 }
 0x19e   :  { %v652_v37 = vpop.f32.mrf.mxu1 }
 0x19f   :  { %v204_v42 = vmax.f32 %v198_v38, 0.0 }
 0x1a0   :  { %v200_v39 = vpop.f32.mrf.mxu1 }
 0x1a1   :  { %v201_v40 = vadd.f32 %v554_v35, %v200_v39 }
 0x1a2   :  { %v653_v41 = vpop.f32.mrf.mxu1 }
 0x1a3   :  { %v205_v43 = vmax.f32 %v201_v40, 0.0 }
 0x1a5   :  { %v206_v44 = vpack.c.bf16 %v205_v43, %v204_v42 }
 0x1a7   :  { %671 = vmatmul.mubr.bf16.vlgmr.msra.gmra.mxu0 %v206_v44 }
 0x1a8   :  { %710 = vmatprep.mubr.msk.bf16.mxu0 %vm777_vm0, %v776_v0  ;;  %695 = vmatpush3.bf16.msra.mxu0 %v743_v48 }
 0x1a9   :  { %696 = vmatprep.subr.bf16.mxu0 %v776_v0 }
 0x1ac   :  { %697 = vmatpush3.bf16.msra.mxu0 %v744_v49 }
 0x1ad   :  { %698 = vmatprep.subr.bf16.mxu0 %v776_v0 }
 0x1b0   :  { %699 = vmatpush3.bf16.msra.mxu0 %v745_v50 }
 0x1b1   :  { %700 = vmatprep.subr.bf16.mxu0 %v776_v0 }
 0x1b4   :  { %701 = vmatpush3.bf16.msra.mxu0 %v746_v51 }
 0x1b5   :  { %702 = vmatprep.subr.bf16.mxu0 %v776_v0 }
 0x1b8   :  { %703 = vmatpush3.bf16.msra.mxu0 %v747_v52 }
 0x1b9   :  { %704 = vmatprep.subr.bf16.mxu0 %v776_v0 }
 0x1bc   :  { %705 = vmatpush3.bf16.msra.mxu0 %v748_v63 }
 0x1bd   :  { %706 = vmatprep.subr.bf16.mxu0 %v776_v0 }
 0x1c0   :  { %707 = vmatpush3.bf16.msra.mxu0 %v749_v1 }
 0x1c1   :  { %708 = vmatprep.subr.bf16.mxu0 %v776_v0  ;;  %v581_v0 = vld [vmem:[%s915_s4 + $0x4] ss:$0 sm:$0xff] }
 0x1c4   :  { %709 = vmatpush3.bf16.msra.mxu0 %v750_v2 }
 0x267   :  { %v311_v54 = vpop.f32.mrf.mxu0 }
 0x268   :  { %v312_v56 = vadd.f32 %v563_v53, %v311_v54 }
 0x269   :  { %v672_v55 = vpop.f32.mrf.mxu0 }
 0x26a   :  { %v318_v60 = vmax.f32 %v312_v56, 0.0 }
 0x26b   :  { %v314_v57 = vpop.f32.mrf.mxu0 }
 0x26c   :  { %v315_v58 = vadd.f32 %v563_v53, %v314_v57 }
 0x26d   :  { %v673_v59 = vpop.f32.mrf.mxu0 }
 0x26e   :  { %v319_v61 = vmax.f32 %v315_v58, 0.0 }
 0x270   :  { %v320_v62 = vpack.c.bf16 %v319_v61, %v318_v60 }
 0x272   :  { %691 = vmatmul.mubr.bf16.vlgmr.msra.gmra.mxu1 %v320_v62 }
 0x332   :  { %v425_v4 = vpop.f32.mrf.mxu1 }
 0x333   :  { %v426_v6 = vadd.f32 %v572_v3, %v425_v4 }
 0x334   :  { %v692_v5 = vpop.f32.mrf.mxu1 }
 0x335   :  { %v432_v10 = vmax.f32 %v426_v6, 0.0 }
 0x336   :  { %v428_v7 = vpop.f32.mrf.mxu1 }
 0x337   :  { %v429_v8 = vadd.f32 %v572_v3, %v428_v7 }
 0x338   :  { %v693_v9 = vpop.f32.mrf.mxu1 }
 0x339   :  { %v433_v11 = vmax.f32 %v429_v8, 0.0 }
 0x33b   :  { %v434_v12 = vpack.c.bf16 %v433_v11, %v432_v10 }
 0x33d   :  { %711 = vmatmul.mubr.bf16.vlgmr.msra.gmra.mxu0 %v434_v12 }
 0x3fd   :  { %v538_v13 = vpop.f32.mrf.mxu0 }
 0x3fe   :  { %v539_v14 = vadd.f32 %v581_v0, %v538_v13 }
 0x3ff   :  { %v712_v15 = vpop.f32.mrf.mxu0 }
 0x400   :  { %545 = vst.msk [vmem:[%s916_s5] sm:$0xff] %vm44_vm2, %v539_v14 }
 0x401   :  { %v541_v16 = vpop.f32.mrf.mxu0 }
 0x402   :  { %v542_v17 = vadd.f32 %v581_v0, %v541_v16 }
 0x403   :  { %v713_v18 = vpop.f32.mrf.mxu0 }
 0x404   :  { %546 = vst.msk [vmem:[%s916_s5 + $0x8] sm:$0xff] %vm44_vm2, %v542_v17 }
 0x405   :  { %551 = vsyncpa [#allocation3], 1 }

</bundles_post_ra>
